<compile_context>
chip_gen: v6e
topology: v6e:2x2x1
jax: 0.10.0
libtpu: 0.0.40
codegen_flags: <defaults>
</compile_context>

<pallas_src>
import functools
import math

import numpy as np

import jax
import jax.numpy as jnp
from jax.experimental import pallas as pl
from jax.experimental.pallas import tpu as pltpu


# ----------------------------------------------------------------------------
# Pallas kernel: bilinear resize (2 bf16 matmuls) + output-side normalize + pad
# ----------------------------------------------------------------------------
def _resize_norm_pad_kernel(scale_ref, bias_ref, hsz_ref, wsz_ref,
                            img_ref, wh_ref, wwt_ref, out_ref,
                            *, tile_h, w_pad, wh_first):
    n = pl.program_id(0)
    c = pl.program_id(1)
    t = pl.program_id(2)

    h_out = hsz_ref[n]          # resized (pre-batch-pad) height of image n
    w_out = wsz_ref[n]          # resized (pre-batch-pad) width  of image n
    row0 = t * tile_h           # first output row of this h-tile

    @pl.when(row0 < h_out)
    def _compute():
        # slice this h-tile's rows out of the per-image Wh (DMA'd once per image)
        start = pl.multiple_of(t * tile_h, tile_h)
        wh_tile = wh_ref[pl.ds(start, tile_h), :]            # (tile_h, H_max) bf16
        x = img_ref[...]                                      # (H_max, W_max) bf16

        if wh_first:
            tmp = jnp.dot(wh_tile, x, preferred_element_type=jnp.float32)
            res = jnp.dot(tmp.astype(jnp.bfloat16), wwt_ref[...],
                          preferred_element_type=jnp.float32)
        else:
            tmp = jnp.dot(x, wwt_ref[...], preferred_element_type=jnp.float32)
            res = jnp.dot(wh_tile, tmp.astype(jnp.bfloat16),
                          preferred_element_type=jnp.float32)

        # output-side normalization: one FMA on the (tile_h, w_pad) tile, masked so
        # the batch-padding region stays exactly zero (torchvision semantics).
        rows = jax.lax.broadcasted_iota(jnp.int32, (tile_h, w_pad), 0) + row0
        cols = jax.lax.broadcasted_iota(jnp.int32, (tile_h, w_pad), 1)
        valid = jnp.logical_and(rows < h_out, cols < w_out)
        out = jnp.where(valid, res * scale_ref[c] + bias_ref[c], 0.0)
        out_ref[...] = out.astype(out_ref.dtype)

    @pl.when(row0 >= h_out)
    def _skip():
        # whole tile is batch padding for this image -> skip both matmuls (MXU save)
        out_ref[...] = jnp.zeros_like(out_ref)


# ----------------------------------------------------------------------------
# Tiling / VMEM sizing (generation-aware)
# ----------------------------------------------------------------------------
def _vmem_capacity_bytes():
    try:
        info = pltpu.get_tpu_info()
        cap = int(getattr(info, "vmem_capacity_bytes", 0) or 0)
        if cap > 0:
            return cap
    except Exception:
        pass
    return 128 * 1024 * 1024


def _vmem_estimate(tile_h, h_in, w_in, h_pad, w_pad):
    img = h_in * w_in * 2            # bf16 input channel block
    wh = h_pad * h_in * 2            # bf16 full per-image Wh
    wwt = w_in * w_pad * 2           # bf16 Ww^T
    out = tile_h * w_pad * 4         # f32 output tile
    inter_mm = max(tile_h * w_in, h_in * w_pad if tile_h >= h_pad else 0) * 6
    inter = (tile_h * h_in * 2       # Wh slice copy (bf16)
             + inter_mm              # matmul intermediate (f32 + bf16 recast)
             + tile_h * w_pad * 20)  # res f32, iotas, mask, FMA/where temps
    return 2 * (img + wh + wwt + out) + inter


def _pick_tile_h(h_pad, h_in, w_in, w_pad, budget, target=512):
    # divisors of h_pad that are multiples of 16 (bf16 sublane-aligned slice starts)
    cands = [t for t in range(16, min(h_pad, target) + 1, 16) if h_pad % t == 0]
    if not cands:
        cands = [h_pad]
    # preference: MXU-friendly 256-/128-multiples first, then larger tiles
    def score(t):
        return (t % 256 == 0, t % 128 == 0, t)
    for t in sorted(cands, key=score, reverse=True):
        if _vmem_estimate(t, h_in, w_in, h_pad, w_pad) <= budget:
            return t
    return min(cands)


def _batch_resize_normalize_pad(scale, bias, h_sizes, w_sizes, imgs, wh_all, wwt_all):
    """imgs: [N, C, H_max, W_max] bf16; wh_all: [N, h_pad, H_max] bf16;
    wwt_all: [N, W_max, w_pad] bf16 -> [N, C, h_pad, w_pad] f32."""
    N, C, H_in, W_in = imgs.shape
    _, h_pad, _ = wh_all.shape
    _, _, w_pad = wwt_all.shape

    cap = _vmem_capacity_bytes()
    budget = cap * 7 // 10
    tile_h = _pick_tile_h(h_pad, H_in, W_in, w_pad, budget)
    n_ht = h_pad // tile_h

    # contraction order: Wh-first is required when tiling h_out (otherwise the
    # x@Wwt intermediate would be recomputed per tile); else pick the cheaper order.
    if n_ht > 1:
        wh_first = True
    else:
        cost_a = h_pad * H_in * W_in + h_pad * W_in * w_pad     # (Wh @ x) @ Wwt
        cost_b = H_in * W_in * w_pad + h_pad * H_in * w_pad     # Wh @ (x @ Wwt)
        wh_first = cost_a <= cost_b

    est = _vmem_estimate(tile_h, H_in, W_in, h_pad, w_pad)
    vmem_limit = max(est * 5 // 4 + (4 << 20), budget)
    vmem_limit = int(min(vmem_limit, cap * 92 // 100))

    kernel = functools.partial(_resize_norm_pad_kernel,
                               tile_h=tile_h, w_pad=w_pad, wh_first=wh_first)
    return pl.pallas_call(
        kernel,
        out_shape=jax.ShapeDtypeStruct((N, C, h_pad, w_pad), jnp.float32),
        grid=(N, C, n_ht),
        in_specs=[
            pl.BlockSpec(memory_space=pltpu.SMEM),                    # scale (C,)
            pl.BlockSpec(memory_space=pltpu.SMEM),                    # bias  (C,)
            pl.BlockSpec(memory_space=pltpu.SMEM),                    # h_out (N,)
            pl.BlockSpec(memory_space=pltpu.SMEM),                    # w_out (N,)
            pl.BlockSpec((None, None, H_in, W_in),
                         lambda n, c, t: (n, c, 0, 0)),               # raw bf16 channel
            pl.BlockSpec((None, h_pad, H_in),
                         lambda n, c, t: (n, 0, 0)),                  # full Wh per image
            pl.BlockSpec((None, W_in, w_pad),
                         lambda n, c, t: (n, 0, 0)),                  # Ww^T per image
        ],
        out_specs=pl.BlockSpec((None, None, tile_h, w_pad),
                               lambda n, c, t: (n, c, t, 0)),
        compiler_params=pltpu.CompilerParams(
            dimension_semantics=("parallel", "parallel", "parallel"),
            vmem_limit_bytes=vmem_limit),
    )(scale, bias, h_sizes, w_sizes, imgs, wh_all, wwt_all)


# ----------------------------------------------------------------------------
# Glue: exact PyTorch-equivalent size math + host-numpy interpolation matrices
# ----------------------------------------------------------------------------
def _compute_resized_size(h, w, self_min_size, self_max_size):
    # mirrors _resize_image's scale logic with recompute_scale_factor=True
    min_size = float(min(h, w))
    max_size = float(max(h, w))
    scale_factor = self_min_size / min_size
    if max_size * scale_factor > self_max_size:
        scale_factor = self_max_size / max_size
    h_out = int(math.floor(h * scale_factor))
    w_out = int(math.floor(w * scale_factor))
    return h_out, w_out


def _bilinear_matrix_np(in_size, out_size):
    # torch upsample_bilinear2d, align_corners=False, scale recomputed as in/out
    scale = np.float32(in_size) / np.float32(out_size)
    dst = np.arange(out_size, dtype=np.float32)
    src = np.maximum((dst + np.float32(0.5)) * scale - np.float32(0.5), np.float32(0.0))
    i0 = np.clip(np.floor(src).astype(np.int64), 0, in_size - 1)
    i1 = np.minimum(i0 + 1, in_size - 1)
    w1 = (src - i0.astype(np.float32)).astype(np.float32)
    w0 = np.float32(1.0) - w1
    rows = np.arange(out_size)
    W = np.zeros((out_size, in_size), np.float32)
    W[rows, i0] += w0
    W[rows, i1] += w1
    return W


def _resize_boxes(boxes, original_size, new_size):
    ratio_h = float(new_size[0]) / float(original_size[0])
    ratio_w = float(new_size[1]) / float(original_size[1])
    xmin, ymin, xmax, ymax = boxes[:, 0], boxes[:, 1], boxes[:, 2], boxes[:, 3]
    return jnp.stack(
        [xmin * ratio_w, ymin * ratio_h, xmax * ratio_w, ymax * ratio_h], axis=1)


class ImageList:
    def __init__(self, tensors, image_sizes):
        self.tensors = tensors
        self.image_sizes = image_sizes


class GeneralizedRCNNTransformPallas:
    def __init__(self, min_size, max_size, image_mean, image_std):
        if not isinstance(min_size, (list, tuple)):
            min_size = (min_size,)
        self.min_size = min_size
        self.max_size = max_size
        self.image_mean = [float(m) for m in image_mean]
        self.image_std = [float(s) for s in image_std]

    def forward(self, images, targets=None, size_divisible=32):
        # eval-mode: size = min_size[-1]
        self_min = float(self.min_size[-1])
        self_max = float(self.max_size)

        # 1) resized sizes (static python math, same as torch)
        in_sizes = [(int(img.shape[-2]), int(img.shape[-1])) for img in images]
        resized_sizes = [_compute_resized_size(h, w, self_min, self_max)
                         for h, w in in_sizes]

        # 2) batch_images padding target (size_divisible)
        max_h = max(s[0] for s in resized_sizes)
        max_w = max(s[1] for s in resized_sizes)
        stride = float(size_divisible)
        h_pad = int(math.ceil(float(max_h) / stride) * stride)
        w_pad = int(math.ceil(float(max_w) / stride) * stride)

        # 3) pad ragged inputs to a common spatial size directly in bf16 (halves the
        #    HBM write+read of the stacked batch and the kernel's input DMA).
        H_max = max(h for h, _ in in_sizes)
        W_max = max(w for _, w in in_sizes)
        padded = [jnp.pad(img.astype(jnp.bfloat16),
                          ((0, 0), (0, H_max - h), (0, W_max - w)))
                  for img, (h, w) in zip(images, in_sizes)]
        imgs = jnp.stack(padded, axis=0)                       # (N, C, H_max, W_max)

        # 4) per-image interpolation matrices, built on host with numpy and embedded
        #    in zero-padded canvases (zero rows/cols implement both ragged-input
        #    masking and batch padding).
        N = len(images)
        wh_np = np.zeros((N, h_pad, H_max), np.float32)
        wwt_np = np.zeros((N, W_max, w_pad), np.float32)
        for i, ((h_in, w_in), (h_out, w_out)) in enumerate(zip(in_sizes, resized_sizes)):
            wh_np[i, :h_out, :h_in] = _bilinear_matrix_np(h_in, h_out)
            wwt_np[i, :w_in, :w_out] = _bilinear_matrix_np(w_in, w_out).T
        wh_all = jnp.asarray(wh_np, dtype=jnp.bfloat16)        # (N, h_pad, H_max)
        wwt_all = jnp.asarray(wwt_np, dtype=jnp.bfloat16)      # (N, W_max, w_pad)

        scale = jnp.asarray([1.0 / s for s in self.image_std], jnp.float32)
        bias = jnp.asarray([-m / s for m, s in zip(self.image_mean, self.image_std)],
                           jnp.float32)
        h_sizes = jnp.asarray([s[0] for s in resized_sizes], jnp.int32)
        w_sizes = jnp.asarray([s[1] for s in resized_sizes], jnp.int32)

        # 5) single fused Pallas kernel: resize + normalize + pad for the whole batch
        batched_imgs = _batch_resize_normalize_pad(scale, bias, h_sizes, w_sizes,
                                                   imgs, wh_all, wwt_all)

        # 6) targets: rescale boxes (tiny elementwise op, plain JAX)
        new_targets = None if targets is None else list(targets)
        if targets is not None:
            for i in range(len(images)):
                if targets[i] is not None:
                    t = dict(targets[i])
                    t["boxes"] = _resize_boxes(t["boxes"], in_sizes[i],
                                               resized_sizes[i])
                    new_targets[i] = t

        image_list = ImageList(batched_imgs, resized_sizes)
        return image_list, new_targets


# ----------------------------------------------------------------------------
# Reference (pure JAX, f32) for checking the Pallas kernel output
# ----------------------------------------------------------------------------
def _reference_one(img, mean, std, h_out, w_out, h_pad, w_pad):
    C, h_in, w_in = img.shape
    norm = (img - mean[:, None, None]) / std[:, None, None]
    wh = jnp.asarray(_bilinear_matrix_np(h_in, h_out))
    ww = jnp.asarray(_bilinear_matrix_np(w_in, w_out))
    res = jnp.einsum("oh,chw,pw->cop", wh, norm, ww)
    out = jnp.zeros((C, h_pad, w_pad), jnp.float32)
    return out.at[:, :h_out, :w_out].set(res)


if __name__ == "__main__":
    key = jax.random.PRNGKey(0)
    k0, k1, k2, k3 = jax.random.split(key, 4)

    # two small images with different [C, H, W] shapes (list input, like torch)
    img0 = jax.random.uniform(k0, (3, 20, 30), jnp.float32)
    img1 = jax.random.uniform(k1, (3, 24, 18), jnp.float32)
    boxes0 = jax.random.uniform(k2, (5, 4), jnp.float32) * 16.0
    boxes1 = jax.random.uniform(k3, (4, 4), jnp.float32) * 16.0
    targets = [{"boxes": boxes0}, {"boxes": boxes1}]

    transform = GeneralizedRCNNTransformPallas(
        min_size=16, max_size=24,
        image_mean=[0.485, 0.456, 0.406],
        image_std=[0.229, 0.224, 0.225])

    image_list, new_targets = transform.forward([img0, img1], targets)
    jax.block_until_ready(image_list.tensors)
    jax.block_until_ready(new_targets[0]["boxes"])

    # sanity check against pure-JAX f32 reference.  Both images and interpolation
    # weights run through the MXU in bf16 (and normalization is applied after the
    # resize), so tolerance is looser than f32 torch bit-parity.
    n, c, hp, wp = image_list.tensors.shape
    mean = jnp.asarray(transform.image_mean, jnp.float32)
    std = jnp.asarray(transform.image_std, jnp.float32)
    for i, img in enumerate([img0, img1]):
        h_out, w_out = image_list.image_sizes[i]
        ref = _reference_one(img, mean, std, h_out, w_out, hp, wp)
        err = float(jnp.max(jnp.abs(image_list.tensors[i] - ref)))
        assert err < 8e-2, f"mismatch on image {i}: max abs err {err}"
        # batch-padding region must be exactly zero (torchvision semantics)
        if h_out < hp:
            assert float(jnp.max(jnp.abs(image_list.tensors[i, :, h_out:, :]))) == 0.0
        if w_out < wp:
            assert float(jnp.max(jnp.abs(image_list.tensors[i, :, :, w_out:]))) == 0.0

    assert image_list.tensors.shape == (2, 3, 32, 32)
    assert image_list.image_sizes == [(16, 24), (21, 16)]
    assert new_targets[0]["boxes"].shape == (5, 4)
    print("KERNEL_OK")
</pallas_src>

<mosaic_0001>
module attributes {stable_mosaic.version = 11 : i64} {
  func.func @_resize_norm_pad_kernel(%arg0: i32, %arg1: i32, %arg2: i32, %arg3: memref<3xf32, #tpu.memory_space<smem>>, %arg4: memref<3xf32, #tpu.memory_space<smem>>, %arg5: memref<2xi32, #tpu.memory_space<smem>>, %arg6: memref<2xi32, #tpu.memory_space<smem>>, %arg7: memref<1x1x24x30xbf16, #tpu.memory_space<vmem>>, %arg8: memref<1x32x24xbf16, #tpu.memory_space<vmem>>, %arg9: memref<1x30x32xbf16, #tpu.memory_space<vmem>>, %arg10: memref<1x1x32x32xf32, #tpu.memory_space<vmem>>) attributes {dimension_semantics = [#tpu.dimension_semantics<parallel>, #tpu.dimension_semantics<parallel>, #tpu.dimension_semantics<parallel>], iteration_bounds = array<i64: 2, 3, 1>, scalar_prefetch = 0 : i64, scratch_operands = 0 : i64, tpu.core_type = #tpu.core_type<tc>, window_params = [{transform_indices = @transform_0, window_bounds = array<i64: 3>}, {transform_indices = @transform_1, window_bounds = array<i64: 3>}, {transform_indices = @transform_2, window_bounds = array<i64: 2>}, {transform_indices = @transform_3, window_bounds = array<i64: 2>}, {transform_indices = @transform_4, window_bounds = array<i64: 1, 1, 24, 30>}, {transform_indices = @transform_5, window_bounds = array<i64: 1, 32, 24>}, {transform_indices = @transform_6, window_bounds = array<i64: 1, 30, 32>}, {transform_indices = @transform_7, window_bounds = array<i64: 1, 1, 32, 32>}]} {
    %0 = arith.index_cast %arg0 : i32 to index
    %1 = memref.load %arg5[%0] : memref<2xi32, #tpu.memory_space<smem>>
    %2 = arith.index_cast %arg0 : i32 to index
    %3 = memref.load %arg6[%2] : memref<2xi32, #tpu.memory_space<smem>>
    %c32_i32 = arith.constant 32 : i32
    %4 = arith.muli %arg2, %c32_i32 : i32
    %5 = arith.cmpi slt, %4, %1 : i32
    %6 = arith.extui %5 : i1 to i32
    %c0_i32 = arith.constant 0 : i32
    %7 = arith.cmpi ne, %6, %c0_i32 : i32
    scf.if %7 {
      %c32_i32_1 = arith.constant 32 : i32
      %11 = arith.muli %arg2, %c32_i32_1 : i32
      %12 = tpu.assume_multiple %11, 32 : i32
      %c0 = arith.constant 0 : index
      %13 = arith.index_cast %12 : i32 to index
      %c0_2 = arith.constant 0 : index
      %14 = vector.load %arg8[%c0, %13, %c0_2] : memref<1x32x24xbf16, #tpu.memory_space<vmem>>, vector<1x32x24xbf16>
      %15 = vector.shape_cast %14 : vector<1x32x24xbf16> to vector<32x24xbf16>
      %c0_3 = arith.constant 0 : index
      %c0_4 = arith.constant 0 : index
      %c0_5 = arith.constant 0 : index
      %c0_6 = arith.constant 0 : index
      %16 = vector.load %arg7[%c0_3, %c0_4, %c0_5, %c0_6] : memref<1x1x24x30xbf16, #tpu.memory_space<vmem>>, vector<1x1x24x30xbf16>
      %17 = vector.shape_cast %16 : vector<1x1x24x30xbf16> to vector<24x30xbf16>
      %c0_7 = arith.constant 0 : index
      %c0_8 = arith.constant 0 : index
      %c0_9 = arith.constant 0 : index
      %18 = vector.load %arg9[%c0_7, %c0_8, %c0_9] : memref<1x30x32xbf16, #tpu.memory_space<vmem>>, vector<1x30x32xbf16>
      %19 = vector.shape_cast %18 : vector<1x30x32xbf16> to vector<30x32xbf16>
      %cst = arith.constant dense<0.000000e+00> : vector<24x32xf32>
      %20 = tpu.matmul %17, %19, %cst {dimension_numbers = #tpu.dot_dimension_numbers<[1], [0], [0], [1], [0, 0, 1, 1], [], []>} : vector<24x30xbf16>, vector<30x32xbf16>, vector<24x32xf32> -> vector<24x32xf32>
      %21 = arith.truncf %20 : vector<24x32xf32> to vector<24x32xbf16>
      %cst_10 = arith.constant dense<0.000000e+00> : vector<32x32xf32>
      %22 = tpu.matmul %15, %21, %cst_10 {dimension_numbers = #tpu.dot_dimension_numbers<[1], [0], [0], [1], [0, 0, 1, 1], [], []>} : vector<32x24xbf16>, vector<24x32xbf16>, vector<32x32xf32> -> vector<32x32xf32>
      %23 = tpu.iota {dimensions = array<i32: 0>} : vector<32x32xi32>
      %24 = vector.broadcast %4 : i32 to vector<32x32xi32>
      %25 = arith.addi %23, %24 : vector<32x32xi32>
      %26 = tpu.iota {dimensions = array<i32: 1>} : vector<32x32xi32>
      %27 = vector.broadcast %1 : i32 to vector<32x32xi32>
      %28 = arith.cmpi slt, %25, %27 : vector<32x32xi32>
      %29 = vector.broadcast %3 : i32 to vector<32x32xi32>
      %30 = arith.cmpi slt, %26, %29 : vector<32x32xi32>
      %31 = arith.andi %28, %30 : vector<32x32xi1>
      %32 = arith.index_cast %arg1 : i32 to index
      %33 = memref.load %arg3[%32] : memref<3xf32, #tpu.memory_space<smem>>
      %34 = vector.broadcast %33 : f32 to vector<32x32xf32>
      %35 = arith.mulf %22, %34 : vector<32x32xf32>
      %36 = arith.index_cast %arg1 : i32 to index
      %37 = memref.load %arg4[%36] : memref<3xf32, #tpu.memory_space<smem>>
      %38 = vector.broadcast %37 : f32 to vector<32x32xf32>
      %39 = arith.addf %35, %38 : vector<32x32xf32>
      %cst_11 = arith.constant 0.000000e+00 : f32
      %40 = vector.broadcast %cst_11 : f32 to vector<32x32xf32>
      %41 = arith.select %31, %39, %40 : vector<32x32xi1>, vector<32x32xf32>
      %c0_12 = arith.constant 0 : index
      %c0_13 = arith.constant 0 : index
      %c0_14 = arith.constant 0 : index
      %c0_15 = arith.constant 0 : index
      %42 = vector.load %arg10[%c0_12, %c0_13, %c0_14, %c0_15] : memref<1x1x32x32xf32, #tpu.memory_space<vmem>>, vector<1x1x32x32xf32>
      %43 = vector.shape_cast %42 : vector<1x1x32x32xf32> to vector<32x32xf32>
      %44 = vector.shape_cast %41 : vector<32x32xf32> to vector<1x1x32x32xf32>
      tpu.vector_store %arg10[%c0_12, %c0_13, %c0_14, %c0_15], %44 {strides = array<i32>} : memref<1x1x32x32xf32, #tpu.memory_space<vmem>>, vector<1x1x32x32xf32>,
    } else {
    }
    %8 = arith.cmpi sge, %4, %1 : i32
    %9 = arith.extui %8 : i1 to i32
    %c0_i32_0 = arith.constant 0 : i32
    %10 = arith.cmpi ne, %9, %c0_i32_0 : i32
    scf.if %10 {
      %cst = arith.constant 0.000000e+00 : f32
      %11 = vector.broadcast %cst : f32 to vector<32x32xf32>
      %c0 = arith.constant 0 : index
      %c0_1 = arith.constant 0 : index
      %c0_2 = arith.constant 0 : index
      %c0_3 = arith.constant 0 : index
      %12 = vector.load %arg10[%c0, %c0_1, %c0_2, %c0_3] : memref<1x1x32x32xf32, #tpu.memory_space<vmem>>, vector<1x1x32x32xf32>
      %13 = vector.shape_cast %12 : vector<1x1x32x32xf32> to vector<32x32xf32>
      %14 = vector.shape_cast %11 : vector<32x32xf32> to vector<1x1x32x32xf32>
      tpu.vector_store %arg10[%c0, %c0_1, %c0_2, %c0_3], %14 {strides = array<i32>} : memref<1x1x32x32xf32, #tpu.memory_space<vmem>>, vector<1x1x32x32xf32>,
    } else {
    }
    return
  }
  func.func @transform_0(%arg0: i32, %arg1: i32, %arg2: i32) -> i32 {
    %c0_i32 = arith.constant 0 : i32
    %c0_i32_0 = arith.constant 0 : i32
    return %c0_i32 : i32
  }
  func.func @transform_1(%arg0: i32, %arg1: i32, %arg2: i32) -> i32 {
    %c0_i32 = arith.constant 0 : i32
    %c0_i32_0 = arith.constant 0 : i32
    return %c0_i32 : i32
  }
  func.func @transform_2(%arg0: i32, %arg1: i32, %arg2: i32) -> i32 {
    %c0_i32 = arith.constant 0 : i32
    %c0_i32_0 = arith.constant 0 : i32
    return %c0_i32 : i32
  }
  func.func @transform_3(%arg0: i32, %arg1: i32, %arg2: i32) -> i32 {
    %c0_i32 = arith.constant 0 : i32
    %c0_i32_0 = arith.constant 0 : i32
    return %c0_i32 : i32
  }
  func.func @transform_4(%arg0: i32, %arg1: i32, %arg2: i32) -> (i32, i32, i32, i32) {
    %c0_i32 = arith.constant 0 : i32
    %c0_i32_0 = arith.constant 0 : i32
    %c0_i32_1 = arith.constant 0 : i32
    return %arg0, %arg1, %c0_i32, %c0_i32_0 : i32, i32, i32, i32
  }
  func.func @transform_5(%arg0: i32, %arg1: i32, %arg2: i32) -> (i32, i32, i32) {
    %c0_i32 = arith.constant 0 : i32
    %c0_i32_0 = arith.constant 0 : i32
    %c0_i32_1 = arith.constant 0 : i32
    return %arg0, %c0_i32, %c0_i32_0 : i32, i32, i32
  }
  func.func @transform_6(%arg0: i32, %arg1: i32, %arg2: i32) -> (i32, i32, i32) {
    %c0_i32 = arith.constant 0 : i32
    %c0_i32_0 = arith.constant 0 : i32
    %c0_i32_1 = arith.constant 0 : i32
    return %arg0, %c0_i32, %c0_i32_0 : i32, i32, i32
  }
  func.func @transform_7(%arg0: i32, %arg1: i32, %arg2: i32) -> (i32, i32, i32, i32) {
    %c0_i32 = arith.constant 0 : i32
    %c0_i32_0 = arith.constant 0 : i32
    return %arg0, %arg1, %arg2, %c0_i32 : i32, i32, i32, i32
  }
}

</mosaic_0001>

<bundles_post_ra>
// kernel: tpu_custom_call.1
= control target key start
LH: loop header
LB: loop body
LE: loop exit
PB: predicated region body
PF: predicated region fallthrough
CT: control target
= control target key end

     0   :  { %s1468_s0 = inlined_call_operand.vmem [shape: f32[3], index: 0, kind: input, shape index: {}]   ;;  %s1469_s1 = inlined_call_operand.vmem [shape: f32[3], index: 1, kind: input, shape index: {}]   ;;  %s1470_s2 = inlined_call_operand.vmem [shape: s32[2], index: 2, kind: input, shape index: {}]   ;;  %s1471_s3 = inlined_call_operand.vmem [shape: s32[2], index: 3, kind: input, shape index: {}]   ;;  %s1472_s4 = inlined_call_operand.vmem [shape: bf16[2,3,24,30], index: 4, kind: input, shape index: {}]   ;;  %s1473_s5 = inlined_call_operand.vmem [shape: bf16[2,32,24], index: 5, kind: input, shape index: {}]   ;;  %s1474_s6 = inlined_call_operand.vmem [shape: bf16[2,30,32], index: 6, kind: input, shape index: {}]   ;;  %s1475_s7 = inlined_call_operand.hbm [shape: f32[2,3,32,32], index: 7, kind: output, shape index: {}]  }
   0x1   :  { %1486 = sst [smem:[#allocation21_spill]] %s1468_s0 }
   0x2   :  { %1487 = sst [smem:[#allocation22_spill]] %s1469_s1 }
   0x3   :  { %1488 = sst [smem:[#allocation23_spill]] %s1470_s2 }
   0x4   :  { %1489 = sst [smem:[#allocation24_spill]] %s1471_s3 }
   0x5   :  { %12 = vsyncpa [#allocation4], 0 }
   0x6   :  { %13 = vsyncpa [#allocation6], 0 }
   0x7   :  { %14 = vsyncpa [#allocation9], 0 }
   0x8   :  { %15 = vsyncpa [#allocation3], 0 }
   0x9   :  { %17 = vsyncpa [#allocation3 + $0x1], 0  ;;  %s1212_s24 = smov 0   ;;  %s1214_s25 = smov 0  }
   0xa   :  { %s1216_s26 = smov 0   ;;  %s1218_s27 = smov 0  }
   0xb   :  { %s1220_s28 = smov 0   ;;  %s1222_s29 = smov 0  }
   0xc   :  { %s1224_s30 = smov 0   ;;  %s1226_s8 = smov 0  }
   0xd LB: > { %1490 = sst [smem:[#allocation15_spill]] %s1142_s26  ;;  %s808_s9 = sadd.s32 4294967295, %s1162_s8   ;;  %s1162_s8 = sphi %s1226_s8, %s23_s8   ;;  %s1158_s30 = sphi %s1224_s30, %s1517_s30   ;;  %s1154_s29 = sphi %s1222_s29, %s1516_s29   ;;  %s1150_s28 = sphi %s1220_s28, %s1515_s28   ;;  %s1146_s27 = sphi %s1218_s27, %s1514_s27   ;;  %s1142_s26 = sphi %s1216_s26, %s1513_s26   ;;  %s1138_s25 = sphi %s1214_s25, %s1519_s25   ;;  %s1134_s24 = sphi %s1212_s24, %s1518_s24  }
   0xe   : > { %1491 = sst [smem:[#allocation16_spill]] %s1154_s29  ;;  %s809_s10 = sadd.s32 4294967294, %s1162_s8  }
   0xf   : > { %1492 = sst [smem:[#allocation17_spill]] %s1158_s30  ;;  %s38_s11 = sadd.s32 1, %s1154_s29 }
  0x10   : > { %s42_s12 = sadd.s32 1, %s1158_s30  ;;  %p40_p0 = scmp.ge.s32.totalorder %s38_s11, 3 }
  0x11   : > { %s217_s13 = sadd.s32 1, %s1142_s26  ;;  %p227_p1 = scmp.ne.s32.totalorder %s1142_s26, %s1138_s25 }
  0x12   : > { %p228_p2 = scmp.eq.s32.totalorder %s808_s9, 5  ;;  %s1521_s11 = smov (%p40_p0, %s38_s11), 0 }
  0x13   : > { %1493 = sst [smem:[#allocation18_spill]] %s1521_s11  ;;  %s1523_s12 = smov (!%p40_p0, %s42_s12), %s1158_s30 }
  0x14   : > { %s211_s14 = ssub.s32 %s1154_s29, %s1521_s11  ;;  %p1264_p3 = por %p228_p2, %p227_p1 }
  0x15   : > { %p44_p4 = scmp.ge.s32.totalorder %s1523_s12, 2  ;;  %p233_p5 = scmp.ne.s32.totalorder %s1138_s25, %s1134_s24 }
  0x16   : > { %s1494_s15 = scalar_select %p1264_p3, 1, 0 }
  0x17   : > { %p234_p6 = scmp.eq.s32.totalorder %s809_s10, 5  ;;  %p810_p7 = scmp.ge.s32.totalorder %s1162_s8, 1 }
  0x18   : > { %s1525_s12 = smov (%p44_p4, %s1523_s12), 0  ;;  %p241_p9 = scmp.lt.s32.totalorder %s1162_s8, 7 }
  0x19   : > { %1495 = sst [smem:[#allocation19_spill]] %s1525_s12  ;;  %p1273_p8 = por %p234_p6, %p233_p5 }
  0x1a   : > { %s210_s17 = ssub.s32 %s1158_s30, %s1525_s12  ;;  %p1280_p10 = pnand %p810_p7, %p241_p9 }
  0x1b   : > { %s1496_s16 = scalar_select %p1273_p8, 1, 0 }
  0x1c   : > { %s212_s18 = sor.u32 %s211_s14, %s210_s17  ;;  %p1284_p12 = scmp.eq.s32.totalorder %s808_s9, 0 }
  0x1d   : > { %s1497_s19 = scalar_select %p1280_p10, 1, 0 }
  0x1e   : > { %p215_p11 = scmp.eq.s32.totalorder %s212_s18, 0  ;;  %p895_p13 = pneg %p1280_p10 }
  0x1f   : > { %s1498_s20 = scalar_select %p1284_p12, 1, 0 }
  0x20   : > { %s1499_s1 = sld [smem:[#allocation22_spill]]  ;;  %p1298_p0 = pnand %p1284_p12, %p895_p13 }
  0x21   : > { %s1294_s10 = scalar_select %p215_p11, %s1142_s26, %s217_s13  }
  0x22   : > { %p1000_p2 = pneg %p1298_p0 }
  0x23   : > { %1500 = sst [smem:[#allocation20_spill]] %s1294_s10 }
  0x26   : > { %s265_s23 = sshll.u32 %s1499_s1, 4  ;;  %s266_s23 = int_to_ptr.vmem [resolvable:$true] %s265_s23 }
  0x27   : > { %s998_s9 = scalar_lea.vmem %s266_s23, 16  ;;  %p1006_p6 = scmp.lt.s32.totalorder %s266_s23, %s266_s23 }
  0x28   : > { %p999_p1 = scmp.ne.s32.totalorder %s266_s23, %s998_s9  ;;  %p1007_p7 = scmp.lt.s32.totalorder %s998_s9, %s998_s9 }
  0x2a   : > { %p1001_p4 = pnand %p1000_p2, %p999_p1  ;;  %p1008_p9 = por %p1007_p7, %p1006_p6 }
  0x2c   : > { %p1002_p5 = pneg %p1001_p4 }
  0x2e   : > { %p1009_p11 = pnand %p1008_p9, %p1002_p5 }
  0x30   : > { %1012 = shalt.err (!%p1009_p11)
}
  0x31   : > { %s1164_s13 = smov [#allocation5]   ;;  %s1502_s0 = sld [smem:[#allocation21_spill]] }
  0x32   : > { %901 = dma.vmem_to_smem (!%p1298_p0), %s266_s23, 16, %s1164_s13, [#allocation6]  }
  0x33   : > { %s1503_s2 = sld [smem:[#allocation23_spill]] }
  0x37   : > { %s254_s21 = sshll.u32 %s1502_s0, 4  ;;  %s255_s21 = int_to_ptr.vmem [resolvable:$true] %s254_s21 }
  0x38   : > { %s1013_s11 = scalar_lea.vmem %s255_s21, 16  ;;  %p1021_p5 = scmp.lt.s32.totalorder %s255_s21, %s255_s21 }
  0x39   : > { %s276_s12 = sshll.u32 %s1503_s2, 4  ;;  %p1014_p13 = scmp.ne.s32.totalorder %s255_s21, %s1013_s11  ;;  %s277_s12 = int_to_ptr.vmem [resolvable:$true] %s276_s12 }
  0x3a   : > { %p1022_p6 = scmp.lt.s32.totalorder %s1013_s11, %s1013_s11 }
  0x3b   : > { %p1016_p1 = pnand %p1014_p13, %p1000_p2 }
  0x3c   : > { %p1023_p7 = por %p1022_p6, %p1021_p5 }
  0x3d   : > { %p1017_p4 = pneg %p1016_p1 }
  0x3f   : > { %p1024_p9 = pnand %p1023_p7, %p1017_p4 }
  0x41   : > { %1027 = shalt.err (!%p1024_p9)
}
  0x42   : > { %s1165_s23 = smov [#allocation2]   ;;  %s1028_s9 = scalar_lea.vmem %s277_s12, 16 }
  0x43   : > { %898 = dma.vmem_to_smem (!%p1298_p0), %s255_s21, 16, %s1165_s23, [#allocation4]  }
  0x44   : > { %p1029_p11 = scmp.ne.s32.totalorder %s277_s12, %s1028_s9  ;;  %p1036_p12 = scmp.lt.s32.totalorder %s277_s12, %s277_s12 }
  0x45   : > { %p1037_p13 = scmp.lt.s32.totalorder %s1028_s9, %s1028_s9 }
  0x46   : > { %p1031_p8 = pnand %p1029_p11, %p1000_p2 }
  0x47   : > { %p1038_p1 = por %p1037_p13, %p1036_p12 }
  0x48   : > { %p1032_p3 = pneg %p1031_p8 }
  0x4a   : > { %p1039_p10 = pnand %p1038_p1, %p1032_p3 }
  0x4c   : > { %1042 = shalt.err (!%p1039_p10)
}
  0x4d   : > { %s1166_s1 = smov [#allocation7]   ;;  %s1504_s3 = sld [smem:[#allocation24_spill]] }
  0x4e   : > { %904 = dma.vmem_to_smem (!%p1298_p0), %s277_s12, 16, %s1166_s1, [#allocation6]  }
  0x53   : > { %s287_s17 = sshll.u32 %s1504_s3, 4  ;;  %s288_s17 = int_to_ptr.vmem [resolvable:$true] %s287_s17 }
  0x54   : > { %s1043_s18 = scalar_lea.vmem %s288_s17, 16  ;;  %p1051_p6 = scmp.lt.s32.totalorder %s288_s17, %s288_s17 }
  0x55   : > { %p1044_p4 = scmp.ne.s32.totalorder %s288_s17, %s1043_s18  ;;  %p1052_p12 = scmp.lt.s32.totalorder %s1043_s18, %s1043_s18 }
  0x57   : > { %p1046_p8 = pnand %p1044_p4, %p1000_p2  ;;  %p1053_p3 = por %p1052_p12, %p1051_p6 }
  0x59   : > { %p1047_p5 = pneg %p1046_p8 }
  0x5b   : > { %p1054_p10 = pnand %p1053_p3, %p1047_p5 }
  0x5d   : > { %1057 = shalt.err (!%p1054_p10)
}
  0x5e   : > { %s1167_s21 = smov [#allocation8]   ;;  %p1505_p7 = scmp.ne.s32.totalorder %s1497_s19, 0 }
  0x5f   : > { %907 = dma.vmem_to_smem (!%p1298_p0), %s288_s17, 16, %s1167_s21, [#allocation9]  }
  0x60   : > { %328 = sbr.rel (%p1505_p7) target bundleno = 579 (0x243), region = 48  ;;  %p1506_p9 = scmp.ne.s32.totalorder (!%p1505_p7), %s1498_s20, 0 }
  0x65   : > { %1117 = dma.done.wait (%p1506_p9), [#allocation4], 16  }
  0x66   : > { %1119 = vsyncadd (%p1506_p9), [#allocation4], 4294967280 }
  0x67   : > { %1121 = dma.done.wait (%p1506_p9), [#allocation6], 32  }
  0x68   : > { %1123 = vsyncadd (%p1506_p9), [#allocation6], 4294967264 }
  0x69   : > { %1125 = dma.done.wait (%p1506_p9), [#allocation9], 16  }
  0x6a   : > { %1127 = vsyncadd (%p1506_p9), [#allocation9], 4294967280 }
  0x6b   : > { %346 = sfence }
  0x6c   : > { %s1482_s12 = sand.u32 1, %s1138_s25   ;;  %p387_p0 = scmp.lt.s32.totalorder %s1150_s28, 1 }
  0x6d   : > { %s821_s19 = sshll.u32 %s1482_s12, 5  ;;  %p389_p2 = scmp.lt.s32.totalorder %s1146_s27, 2 }
  0x6e   : > { %s1353_s14 = sld [smem:[#allocation7 + %s1150_s28]]  ;;  %s1371_s26 = scalar_lea.vmem [#allocation10], %s821_s19 }
  0x6f   : > { %s388_s22 = scalar_select %p387_p0, %s1150_s28, 1 }
  0x70   : > { %s390_s23 = scalar_select %p389_p2, %s1146_s27, 2 }
  0x71   : > { %s875_s20 = smul.u32 9, %s388_s22  ;;  %s846_s9 = sshll.u32 %s388_s22, 4 }
  0x72   : > { %s874_s1 = smul.u32 3, %s390_s23  ;;  %s1360_s17 = scalar_lea.vmem %s1473_s5, %s846_s9 }
  0x73   : > { %s405_s0 = scalar_lea.vmem %s1474_s6, %s846_s9  ;;  %s1366_s2 = sld [smem:[#allocation8 + %s1150_s28]] }
  0x74   : > { %s393_s12 = sadd.s32 %s875_s20, %s874_s1  ;;  %p828_p11 = scmp.le.s32.totalorder %s1353_s14, 0 }
  0x75   : > { %s822_s3 = sshll.u32 %s393_s12, 2 }
  0x76   : > { %s395_s10 = scalar_lea.vmem %s1472_s4, %s822_s3  ;;  %414 = sbr.rel (%p828_p11) target bundleno = 542 (0x21e), region = 68 }
  0x77   : > { %s609_s3 = sld [smem:[#allocation5 + %s1146_s27]] (!%p828_p11) }
  0x7b   : > { %v992_v0 = vld [vmem:[%s405_s0 + $0x8] sm:$0x7f]   ;;  %vm456_vm0 = vcmask 1046528   ;;  %v993_v1 = vld [vmem:[%s405_s0] sm:$0xff]   ;;  %vm449_vm1 = vcmask 244736   ;;  %vm520_vm2 = vcmask 195584   ;;  %v580_v14 = vlaneseq }
  0x7c   : > { %872 = vmatprep.subr.msk.bf16.mxu0 %vm456_vm0, %v992_v0  ;;  %v458_v2 = vsel %vm456_vm0, %v992_v0, 0  ;;  %v994_v3 = vld [vmem:[%s395_s10] sm:$0xff]   ;;  %v995_v4 = vld [vmem:[%s395_s10 + $0x8] ss:$0 sps:$4 sm:$0xff]   ;;  %vm527_vm3 = vcmask 1043456   ;;  %s603_s0 = sld [smem:[#allocation2 + %s1146_s27]]  ;;  %v592_v18 = vstv %s1353_s14  ;;  %v597_v19 = vstv %s1366_s2 }
  0x7d   : > { %857 = vmatpush3.bf16.msra.mxu0 %v458_v2  ;;  %860 = vmatprep.mubr.msk.bf16.mxu0 %vm449_vm1, %v994_v3  ;;  %v996_v5 = vld [vmem:[%s1360_s17] sm:$0xff]   ;;  %v997_v13 = vld [vmem:[%s1360_s17 + $0x8] sm:$0xff]   ;;  %v581_v15 = vshrl.u32 %v580_v14, 7  ;;  %v591_v17 = vand.u32 127, %v580_v14  ;;  %v610_v24 = vstv %s609_s3  ;;  %vm619_vm8 = vcmask 261120  }
  0x7e   : > { %858 = vmatprep.subr.bf16.mxu0 %v993_v1  ;;  %868 = vmatprep.mubr.msk.bf16.mxu1 %vm520_vm2, %v996_v5 }
  0x7f   : > { %v583_v16 = vadd.s32 16, %v581_v15  ;;  %vm1380_vm5 = vcmp.lt.s32.totalorder %v591_v17, %v597_v19  ;;  %v584_v22 = vadd.s32 24, %v581_v15  ;;  %vm593_vm6 = vcmp.lt.s32.totalorder %v581_v15, %v592_v18 }
  0x80   : > { %v582_v26 = vadd.s32 8, %v581_v15  ;;  %vm599_vm10 = vmand %vm593_vm6, %vm1380_vm5 }
  0x81   : > { %859 = vmatpush3.bf16.msra.mxu0 %v993_v1  ;;  %vm595_vm4 = vcmp.lt.s32.totalorder %v583_v16, %v592_v18  ;;  %vm596_vm9 = vcmp.lt.s32.totalorder %v584_v22, %v592_v18 }
  0x82   : > { %v604_v20 = vstv %s603_s0  ;;  %vm601_vm7 = vmand %vm595_vm4, %vm1380_vm5  ;;  %vm594_vm11 = vcmp.lt.s32.totalorder %v582_v26, %v592_v18 }
  0x83   : > { %vm602_vm12 = vmand %vm596_vm9, %vm1380_vm5 }
  0x84   : > { %861 = vmatmul.mubr.msk.bf16.vlgmr.msra.gmra.mxu0 %vm449_vm1, %v995_v4  ;;  %vm600_vm13 = vmand %vm594_vm11, %vm1380_vm5 }
 0x144   : > { %v862_v6 = vpop.f32.mrf.mxu0 }
 0x145   : > { %v509_v7 = vpack.c.bf16 %v862_v6, %v862_v6 }
 0x146   : > { %v494_v8 = vpop.f32.mrf.mxu0 }
 0x147   : > { %873 = vmatprep.subr.msk.bf16.mxu1 %vm527_vm3, %v509_v7  ;;  %v529_v9 = vsel %vm527_vm3, %v509_v7, 0 }
 0x148   : > { %v863_v10 = vpop.f32.mrf.mxu0  ;;  %865 = vmatpush3.bf16.msra.mxu1 %v529_v9 }
 0x14a   : > { %v497_v11 = vpop.f32.mrf.mxu0 }
 0x14b   : > { %v508_v12 = vpack.c.bf16 %v497_v11, %v494_v8 }
 0x14d   : > { %866 = vmatprep.subr.bf16.mxu1 %v508_v12 }
 0x14e   : > { %867 = vmatpush3.bf16.msra.mxu1 %v508_v12 }
 0x151   : > { %869 = vmatmul.mubr.msk.bf16.vlgmr.msra.gmra.mxu1 %vm520_vm2, %v997_v13 }
 0x211   : > { %v870_v23 = vpop.f32.mrf.mxu1 }
 0x212   : > { %v607_v25 = vmul.f32 %v870_v23, %v604_v20 }
 0x213   : > { %v565_v27 = vpop.f32.mrf.mxu1 }
 0x214   : > { %v613_v28 = vadd.f32 %v610_v24, %v607_v25  ;;  %v605_v29 = vmul.f32 %v604_v20, %v565_v27 }
 0x215   : > { %v871_v30 = vpop.f32.mrf.mxu1 }
 0x216   : > { %v617_v31 = vsel %vm601_vm7, %v613_v28, 0.0  ;;  %v611_v32 = vadd.f32 %v610_v24, %v605_v29  ;;  %v608_v33 = vmul.f32 %v871_v30, %v604_v20 }
 0x217   : > { %622 = vst.msk [vmem:[%s1371_s26 + $0x10] sm:$0xff] %vm619_vm8, %v617_v31  ;;  %v568_v34 = vpop.f32.mrf.mxu1 }
 0x218   : > { %v615_v35 = vsel %vm599_vm10, %v611_v32, 0.0  ;;  %v614_v36 = vadd.f32 %v610_v24, %v608_v33  ;;  %v606_v37 = vmul.f32 %v604_v20, %v568_v34 }
 0x219   : > { %620 = vst.msk [vmem:[%s1371_s26] sm:$0xff] %vm619_vm8, %v615_v35 }
 0x21a   : > { %v618_v38 = vsel %vm602_vm12, %v614_v36, 0.0  ;;  %v612_v39 = vadd.f32 %v610_v24, %v606_v37 }
 0x21b   : > { %623 = vst.msk [vmem:[%s1371_s26 + $0x18] sm:$0xff] %vm619_vm8, %v618_v38 }
 0x21c   : > { %v616_v40 = vsel %vm600_vm13, %v612_v39, 0.0 }
 0x21d   : > { %621 = vst.msk [vmem:[%s1371_s26 + $0x8] sm:$0xff] %vm619_vm8, %v616_v40 }
 0x21e PF: > { %p840_p13 = scmp.gt.s32.totalorder %s1353_s14, 0 }
 0x220   : > { %627 = sbr.rel (%p840_p13) target bundleno = 552 (0x228), region = 72 }
 0x225   : > { %vm628_vm14 = vcmask 261120   ;;  %v1168_v41 = vmov 0.0  }
 0x226   : > { %629 = vst.msk [vmem:[%s1371_s26] sm:$0xff] %vm628_vm14, %v1168_v41  ;;  %630 = vst.msk [vmem:[%s1371_s26 + $0x8] sm:$0xff] %vm628_vm14, %v1168_v41 }
 0x227   : > { %631 = vst.msk [vmem:[%s1371_s26 + $0x10] sm:$0xff] %vm628_vm14, %v1168_v41  ;;  %632 = vst.msk [vmem:[%s1371_s26 + $0x18] sm:$0xff] %vm628_vm14, %v1168_v41 }
 0x228 PF: > { %s842_s2 = sshll.u32 %s1146_s27, 2  ;;  %s876_s29 = smul.u32 12, %s1150_s28 }
 0x229   : > { %s651_s30 = sshll.u32 %s1371_s26, 4  ;;  %s1509_s23 = sand.u32 1, %s1138_s25   ;;  %s1408_s30 = int_to_ptr.vmem [resolvable:$true] %s651_s30 }
 0x22a   : > { %s648_s10 = sadd.s32 %s876_s29, %s842_s2  ;;  %s1417_s20 = scalar_lea.sflag [#allocation3], %s1509_s23 }
 0x22b   : > { %s843_s12 = sshll.u32 %s648_s10, 7  ;;  %s1058_s9 = scalar_lea.vmem %s1408_s30, 512 }
 0x22c   : > { %s1413_s22 = scalar_lea.hbm %s1475_s7, %s843_s12  ;;  %p1059_p1 = scmp.ne.s32.totalorder %s1408_s30, %s1058_s9 }
 0x22d   : > { %p1510_p4 = scmp.ne.s32.totalorder %s1494_s15, 0  ;;  %s1169_s26 = smov [#allocation10]  }
 0x22e   : > { %s1062_s27 = sshll.u32 %s1169_s26, 4  ;;  %s1063_s27 = int_to_ptr.vmem [resolvable:$false] %s1062_s27 }
 0x22f   : > { %p1060_p8 = pnand %p1059_p1, %p1510_p4  ;;  %s1064_s28 = scalar_lea.vmem %s1063_s27, 1024 }
 0x230   : > { %p1065_p6 = scmp.lt.s32.totalorder %s1408_s30, %s1063_s27  ;;  %p1066_p12 = scmp.lt.s32.totalorder %s1064_s28, %s1058_s9 }
 0x231   : > { %p1061_p5 = pneg %p1060_p8 }
 0x232   : > { %p1067_p3 = por %p1066_p12, %p1065_p6 }
 0x234   : > { %p1068_p10 = pnand %p1067_p3, %p1061_p5 }
 0x236   : > { %1071 = shalt.err (!%p1068_p10)
}
 0x237   : > { %s1072_s1 = scalar_lea.hbm %s1413_s22, 512  ;;  %s1076_s17 = scalar_lea.hbm %s1475_s7, 3072 }
 0x238   : > { %p1073_p7 = scmp.ne.s32.totalorder %s1413_s22, %s1072_s1  ;;  %p1077_p2 = scmp.lt.s32.totalorder %s1413_s22, %s1475_s7 }
 0x239   : > { %p1078_p11 = scmp.lt.s32.totalorder %s1076_s17, %s1072_s1 }
 0x23a   : > { %p1074_p9 = pnand %p1073_p7, %p1510_p4 }
 0x23b   : > { %p1079_p13 = por %p1078_p11, %p1077_p2 }
 0x23c   : > { %p1075_p0 = pneg %p1074_p9 }
 0x23e   : > { %p1080_p1 = pnand %p1079_p13, %p1075_p0 }
 0x240   : > { %1083 = shalt.err (!%p1080_p1)
}
 0x241   : > { %s1170_s0 = smov 128   ;;  %s1171_s3 = smov 8  }
 0x242   : > { %893 = dma.vmem_to_hbm [thread:$0]  (%p1510_p4), %s1408_s30, 512, %s1413_s22, %s1417_s20, %s1170_s0, %s1170_s0, %s1171_s3  }
 0x243 PF: > { %p920_p8 = scmp.ge.s32.totalorder %s1162_s8, 2  ;;  %s666_s2 = sand.u32 1, %s1134_s24  }
 0x244   : > { %p1511_p5 = scmp.ne.s32.totalorder %s1496_s16, 0  ;;  %s667_s29 = scalar_lea.sflag [#allocation3], %s666_s2 }
 0x246   : > { %p909_p6 = pnand %p920_p8, %p1511_p5 }
 0x248   : > { %p910_p12 = pneg %p909_p6 }
 0x24a   : > { %1129 = dma.done.wait (%p910_p12), %s667_s29, 512  }
 0x24b   : > { %1131 = vsyncadd (%p910_p12), %s667_s29, 4294966784  ;;  %s23_s8 = sadd.s32 1, %s1162_s8   ;;  %s1512_s10 = sld [smem:[#allocation15_spill]] }
 0x24c   : > { %p20_p3 = scmp.ge.s32.totalorder %s23_s8, 8   ;;  %s1513_s26 = sld [smem:[#allocation20_spill]] }
 0x24d   : > { %s1514_s27 = sld [smem:[#allocation16_spill]]  ;;  %s1518_s24 = smov %s1138_s25 }
 0x24e   : > { %s1515_s28 = sld [smem:[#allocation17_spill]]  ;;  %22 = sbr.rel (!%p20_p3) target bundleno = 13 (0xd), region = 115 }
 0x24f   : > { %s1516_s29 = sld [smem:[#allocation18_spill]] }
 0x250   : > { %s1517_s30 = sld [smem:[#allocation19_spill]] }
 0x251   : > { %s1519_s25 = smov %s1512_s10 }
 0x253   :  { %672 = vsyncpa [#allocation3], 1 }
 0x254   :  { %674 = vsyncpa [#allocation3 + $0x1], 1 }
 0x255   :  { %675 = vsyncpa [#allocation4], 1 }
 0x256   :  { %677 = vsyncpa [#allocation4 + $0x1], 1 }
 0x257   :  { %678 = vsyncpa [#allocation6], 1 }
 0x258   :  { %679 = vsyncpa [#allocation9], 1 }

</bundles_post_ra>
